<compile_context>
chip_gen: v6e
topology: v6e:2x2x1
jax: 0.10.0
libtpu: 0.0.40
codegen_flags: <defaults>
</compile_context>

<pallas_src>
import math

import jax
import jax.numpy as jnp
from jax.experimental import pallas as pl
from jax.experimental.pallas import tpu as pltpu


# ---------------------------------------------------------------------------
# Schedule construction (plain JAX "glue", mirrors DDPM.__init__ linear mode)
# ---------------------------------------------------------------------------
def make_linear_schedule(t_max: int, beta_min: float, beta_max: float):
    betas = jnp.linspace(beta_min, beta_max, t_max, dtype=jnp.float32)
    alphas = 1.0 - betas
    alphas_bar = jnp.cumprod(alphas, axis=0)
    return betas, alphas, alphas_bar


# ---------------------------------------------------------------------------
# Layout helpers
# ---------------------------------------------------------------------------
def _sublane_for_itemsize(itemsize: int) -> int:
    # f32 -> 8 sublanes, bf16/f16 -> 16, int8/fp8 -> 32 (packed along sublanes).
    return max(8, 32 // max(itemsize, 1))


def _choose_fold(B: int, CHW: int, sublane: int) -> int:
    """Smallest k dividing CHW s.t. (B*k) fills sublanes and CHW//k is lane-aligned."""
    limit = min(CHW, 4096)
    for k in range(1, limit + 1):
        if CHW % k != 0:
            continue
        if (B * k) % sublane == 0 and (CHW // k) % 128 == 0:
            return k
    for k in range(1, limit + 1):
        if CHW % k != 0:
            continue
        if (B * k) % sublane == 0:
            return k
    return 1


def _choose_tiles(R, F, itemsize, sublane, target_tile_bytes=2 << 20):
    """Sublane/lane-aligned (tile_b, tile_f) dividing (R, F), ~target bytes/buffer."""
    tile_b = sublane if R % sublane == 0 else R
    # Feature tile: halve while it stays a multiple of 128 and over budget.
    tile_f = F
    while tile_b * tile_f * itemsize > target_tile_bytes and tile_f % 256 == 0:
        tile_f //= 2
    # Grow rows back toward the budget while still dividing R.
    while R % (2 * tile_b) == 0 and 2 * tile_b * tile_f * itemsize <= target_tile_bytes:
        tile_b *= 2
    # Keep the grid at >= 2 steps so both v7x TensorCores get work.
    if (R // tile_b) * (F // tile_f) < 2:
        if tile_f % 256 == 0:
            tile_f //= 2
        elif tile_b % (2 * sublane) == 0:
            tile_b //= 2
    return tile_b, tile_f


# ---------------------------------------------------------------------------
# Pallas kernel: xt = x0 * mean + std * noise   (per-row mean/std broadcast)
# ---------------------------------------------------------------------------
def _ddpm_forward_kernel(mean_ref, std_ref, x0_ref, noise_ref, xt_ref):
    x0 = x0_ref[...].astype(jnp.float32)
    noise = noise_ref[...].astype(jnp.float32)
    # mean_ref / std_ref are (TILE_B, 1) float32: per-row broadcast on the VPU.
    xt = x0 * mean_ref[...] + std_ref[...] * noise
    xt_ref[...] = xt.astype(xt_ref.dtype)


def ddpm_forward(x0, t, alphas_bar, key):
    """DDPM.forward: returns (xt, noise). x0 is NCHW, t is int32 (B,)."""
    B, C, H, W = x0.shape
    CHW = C * H * W
    dtype = x0.dtype
    itemsize = jnp.dtype(dtype).itemsize
    sublane = _sublane_for_itemsize(itemsize)

    # noise = randn_like(x0): drawn once here, streamed through the kernel and
    # returned unchanged, so xt == x0*sqrt(ab) + sqrt(1-ab)*noise holds exactly.
    noise = jax.random.normal(key, x0.shape, dtype=dtype)

    # extract(alphas_bar, t, x0.shape) -> per-batch scale vectors (kept f32).
    ab_t = alphas_bar[t].astype(jnp.float32)            # (B,)
    mean_scale = jnp.sqrt(ab_t)                          # (B,)
    std_scale = jnp.sqrt(1.0 - ab_t)                     # (B,)

    # Fold features into the row axis so rows fill the sublane dimension even
    # for small / odd batch sizes (free layout plumbing, no data movement).
    fold = _choose_fold(B, CHW, sublane)
    R, F = B * fold, CHW // fold
    x0_flat = x0.reshape(R, F)
    noise_flat = noise.reshape(R, F)
    mean_rows = jnp.repeat(mean_scale, fold).reshape(R, 1)
    std_rows = jnp.repeat(std_scale, fold).reshape(R, 1)

    tile_b, tile_f = _choose_tiles(R, F, itemsize, sublane)
    grid = (R // tile_b, F // tile_f)
    tile_bytes = tile_b * tile_f * itemsize

    scale_spec = pl.BlockSpec((tile_b, 1), lambda i, j: (i, 0))
    tile_spec = pl.BlockSpec((tile_b, tile_f), lambda i, j: (i, j))

    grid_spec = pltpu.PrefetchScalarGridSpec(
        num_scalar_prefetch=0,
        grid=grid,
        in_specs=[scale_spec, scale_spec, tile_spec, tile_spec],
        out_specs=tile_spec,
    )

    # 3 streamed arrays (x0, noise, xt) x 2 double-buffers, plus slack.
    vmem_limit = min(max(8 * tile_bytes + (2 << 20), 32 << 20), 100 << 20)

    cost = pl.CostEstimate(
        flops=3 * B * CHW,                         # two muls + one add per element
        transcendentals=0,
        bytes_accessed=3 * B * CHW * itemsize,     # read x0, read noise, write xt
    )

    xt_flat = pl.pallas_call(
        _ddpm_forward_kernel,
        out_shape=jax.ShapeDtypeStruct((R, F), dtype),
        grid_spec=grid_spec,
        compiler_params=pltpu.CompilerParams(
            dimension_semantics=("parallel", "parallel"),
            vmem_limit_bytes=vmem_limit,
        ),
        cost_estimate=cost,
    )(mean_rows, std_rows, x0_flat, noise_flat)

    return xt_flat.reshape(B, C, H, W), noise


# ---------------------------------------------------------------------------
# Reference (pure JAX) for a numerical check using the returned noise
# ---------------------------------------------------------------------------
def ddpm_forward_ref(x0, t, alphas_bar, noise):
    B = x0.shape[0]
    ab = alphas_bar[t].reshape(B, 1, 1, 1)
    return x0 * jnp.sqrt(ab) + jnp.sqrt(1.0 - ab) * noise


if __name__ == "__main__":
    # DDPM config (t_max=1000, beta in [1e-4, 0.02], linear schedule)
    T_MAX, BETA_MIN, BETA_MAX = 1000, 1e-4, 0.02
    _, _, alphas_bar = make_linear_schedule(T_MAX, BETA_MIN, BETA_MAX)

    # Small deterministic inputs: batch=2, channels=4, spatial=16x16
    key = jax.random.PRNGKey(0)
    k_x, k_t, k_n = jax.random.split(key, 3)
    B, C, H, W = 2, 4, 16, 16
    x0 = jax.random.normal(k_x, (B, C, H, W), dtype=jnp.float32)
    t = jax.random.randint(k_t, (B,), 0, T_MAX, dtype=jnp.int32)

    xt, noise = ddpm_forward(x0, t, alphas_bar, k_n)
    xt = jax.block_until_ready(xt)
    noise = jax.block_until_ready(noise)

    assert xt.shape == (B, C, H, W) and noise.shape == (B, C, H, W)
    assert bool(jnp.all(jnp.isfinite(xt))) and bool(jnp.all(jnp.isfinite(noise)))

    # The returned noise is exactly the noise the kernel consumed, so the
    # q-sample identity must hold up to f32 rounding.
    xt_ref = ddpm_forward_ref(x0, t, alphas_bar, noise)
    assert jnp.allclose(xt, xt_ref, atol=1e-5, rtol=1e-5)

    # Loose sanity check that the noise is approximately N(0, 1).
    m = float(jnp.mean(noise))
    s = float(jnp.std(noise))
    assert abs(m) < 0.25 and 0.75 < s < 1.25

    print("KERNEL_OK")
</pallas_src>

<mosaic_0001>
module attributes {stable_mosaic.version = 11 : i64} {
  func.func @_ddpm_forward_kernel(%arg0: i32, %arg1: i32, %arg2: memref<8x1xf32, #tpu.memory_space<vmem>>, %arg3: memref<8x1xf32, #tpu.memory_space<vmem>>, %arg4: memref<8x128xf32, #tpu.memory_space<vmem>>, %arg5: memref<8x128xf32, #tpu.memory_space<vmem>>, %arg6: memref<8x128xf32, #tpu.memory_space<vmem>>) attributes {dimension_semantics = [#tpu.dimension_semantics<parallel>, #tpu.dimension_semantics<parallel>], iteration_bounds = array<i64: 1, 2>, scalar_prefetch = 0 : i64, scratch_operands = 0 : i64, tpu.core_type = #tpu.core_type<tc>, window_params = [{transform_indices = @transform_0, window_bounds = array<i64: 8, 1>}, {transform_indices = @transform_1, window_bounds = array<i64: 8, 1>}, {transform_indices = @transform_2, window_bounds = array<i64: 8, 128>}, {transform_indices = @transform_3, window_bounds = array<i64: 8, 128>}, {transform_indices = @transform_4, window_bounds = array<i64: 8, 128>}]} {
    %c0 = arith.constant 0 : index
    %c0_0 = arith.constant 0 : index
    %0 = vector.load %arg4[%c0, %c0_0] : memref<8x128xf32, #tpu.memory_space<vmem>>, vector<8x128xf32>
    %c0_1 = arith.constant 0 : index
    %c0_2 = arith.constant 0 : index
    %1 = vector.load %arg5[%c0_1, %c0_2] : memref<8x128xf32, #tpu.memory_space<vmem>>, vector<8x128xf32>
    %c0_3 = arith.constant 0 : index
    %c0_4 = arith.constant 0 : index
    %2 = vector.load %arg2[%c0_3, %c0_4] : memref<8x1xf32, #tpu.memory_space<vmem>>, vector<8x1xf32>
    %3 = vector.broadcast %2 : vector<8x1xf32> to vector<8x128xf32>
    %4 = arith.mulf %0, %3 : vector<8x128xf32>
    %c0_5 = arith.constant 0 : index
    %c0_6 = arith.constant 0 : index
    %5 = vector.load %arg3[%c0_5, %c0_6] : memref<8x1xf32, #tpu.memory_space<vmem>>, vector<8x1xf32>
    %6 = vector.broadcast %5 : vector<8x1xf32> to vector<8x128xf32>
    %7 = arith.mulf %6, %1 : vector<8x128xf32>
    %8 = arith.addf %4, %7 : vector<8x128xf32>
    %c0_7 = arith.constant 0 : index
    %c0_8 = arith.constant 0 : index
    %9 = vector.load %arg6[%c0_7, %c0_8] : memref<8x128xf32, #tpu.memory_space<vmem>>, vector<8x128xf32>
    tpu.vector_store %arg6[%c0_7, %c0_8], %8 {strides = array<i32>} : memref<8x128xf32, #tpu.memory_space<vmem>>, vector<8x128xf32>,
    return
  }
  func.func @transform_0(%arg0: i32, %arg1: i32) -> (i32, i32) {
    %c0_i32 = arith.constant 0 : i32
    %c0_i32_0 = arith.constant 0 : i32
    return %arg0, %c0_i32 : i32, i32
  }
  func.func @transform_1(%arg0: i32, %arg1: i32) -> (i32, i32) {
    %c0_i32 = arith.constant 0 : i32
    %c0_i32_0 = arith.constant 0 : i32
    return %arg0, %c0_i32 : i32, i32
  }
  func.func @transform_2(%arg0: i32, %arg1: i32) -> (i32, i32) {
    %c0_i32 = arith.constant 0 : i32
    return %arg0, %arg1 : i32, i32
  }
  func.func @transform_3(%arg0: i32, %arg1: i32) -> (i32, i32) {
    %c0_i32 = arith.constant 0 : i32
    return %arg0, %arg1 : i32, i32
  }
  func.func @transform_4(%arg0: i32, %arg1: i32) -> (i32, i32) {
    %c0_i32 = arith.constant 0 : i32
    return %arg0, %arg1 : i32, i32
  }
}

</mosaic_0001>

<bundles_post_ra>
// kernel: tpu_custom_call.1
= control target key start
LH: loop header
LB: loop body
LE: loop exit
PB: predicated region body
PF: predicated region fallthrough
CT: control target
= control target key end

     0   :  { %9 = vsyncpa [#allocation3], 0  ;;  %s823_s0 = inlined_call_operand.vmem [shape: f32[8,1], index: 0, kind: input, shape index: {}]   ;;  %s824_s1 = inlined_call_operand.vmem [shape: f32[8,1], index: 1, kind: input, shape index: {}]   ;;  %s825_s2 = inlined_call_operand.vmem [shape: f32[8,256], index: 2, kind: input, shape index: {}]   ;;  %s826_s3 = inlined_call_operand.hbm [shape: f32[8,256], index: 3, kind: input, shape index: {}]   ;;  %s827_s4 = inlined_call_operand.hbm [shape: f32[8,256], index: 4, kind: output, shape index: {}]  }
   0x1   :  { %11 = vsyncpa [#allocation3 + $0x1], 0 }
   0x2   :  { %12 = vsyncpa [#allocation4], 0 }
   0x3   :  { %14 = vsyncpa [#allocation4 + $0x1], 0  ;;  %s678_s15 = smov 0   ;;  %s680_s16 = smov 0  }
   0x4   :  { %s682_s17 = smov 0   ;;  %s684_s18 = smov 0  }
   0x5   :  { %s686_s19 = smov 0   ;;  %s688_s20 = smov 0  }
   0x6 LB: > { %s460_s21 = sadd.s32 4294967295, %s648_s20   ;;  %s461_s22 = sadd.s32 4294967294, %s648_s20   ;;  %s648_s20 = sphi %s688_s20, %s20_s20   ;;  %s644_s19 = sphi %s686_s19, %s839_s19   ;;  %s640_s18 = sphi %s684_s18, %s838_s18   ;;  %s636_s17 = sphi %s682_s17, %s837_s17   ;;  %s632_s16 = sphi %s680_s16, %s836_s16   ;;  %s628_s15 = sphi %s678_s15, %s835_s15  }
   0x7   : > { %s29_s23 = sadd.s32 1, %s644_s19  ;;  %s121_s24 = sadd.s32 1, %s636_s17 }
   0x8   : > { %p30_p0 = scmp.ge.s32.totalorder %s29_s23, 2  ;;  %p128_p1 = scmp.ne.s32.totalorder %s636_s17, %s632_s16 }
   0x9   : > { %p129_p2 = scmp.eq.s32.totalorder %s648_s20, 0  ;;  %p134_p3 = scmp.ne.s32.totalorder %s632_s16, %s628_s15 }
   0xa   : > { %s841_s23 = smov (%p30_p0, %s29_s23), 0  ;;  %p135_p5 = scmp.eq.s32.totalorder %s460_s21, 0 }
   0xb   : > { %p719_p4 = por %p129_p2, %p128_p1  ;;  %s117_s26 = ssub.s32 %s644_s19, %s841_s23 }
   0xc   : > { %p160_p6 = scmp.eq.s32.totalorder %s460_s21, 1  ;;  %p119_p7 = scmp.eq.s32.totalorder %s117_s26, 0 }
   0xd   : > { %p725_p8 = por %p135_p5, %p134_p3  ;;  %p166_p10 = scmp.eq.s32.totalorder %s461_s22, 1 }
   0xe   : > { %p729_p9 = por %p160_p6, %p128_p1  ;;  %p488_p13 = scmp.lt.s32.totalorder %s648_s20, 2 }
   0xf   : > { %s734_s29 = scalar_select %p119_p7, %s636_s17, %s121_s24  }
  0x10   : > { %p736_p11 = por %p166_p10, %p134_p3  ;;  %s211_s5 = sand.u32 1, %s636_s17  }
  0x11   : > { %s466_s6 = sshll.u32 %s211_s5, 3  ;;  %s467_s7 = sshll.u32 %s644_s19, 7 }
  0x12   : > { %s831_s30 = scalar_select %p736_p11, 1, 0 }
  0x13   : > { %s222_s10 = scalar_lea.hbm %s826_s3, %s467_s7  ;;  %s215_s11 = scalar_lea.vmem [#allocation2], %s466_s6 }
  0x14   : > { %s224_s12 = sshll.u32 %s215_s11, 4  ;;  %p749_p0 = pnand %p488_p13, %p719_p4  ;;  %s225_s12 = int_to_ptr.vmem [resolvable:$true] %s224_s12 }
  0x15   : > { %p468_p1 = scmp.ge.s32.totalorder %s648_s20, 1  ;;  %p229_p2 = scmp.lt.s32.totalorder %s648_s20, 3 }
  0x16   : > { %s212_s14 = scalar_lea.sflag [#allocation3], %s211_s5  ;;  %p542_p3 = pneg %p749_p0 }
  0x17   : > { %s553_s21 = scalar_lea.vmem %s225_s12, 128  ;;  %s650_s22 = smov [#allocation2]  }
  0x18   : > { %p554_p5 = scmp.ne.s32.totalorder %s225_s12, %s553_s21  ;;  %s558_s24 = sshll.u32 %s650_s22, 4  ;;  %s559_s24 = int_to_ptr.vmem [resolvable:$false] %s558_s24 }
  0x19   : > { %s560_s26 = scalar_lea.vmem %s559_s24, 256  ;;  %p561_p10 = scmp.lt.s32.totalorder %s225_s12, %s559_s24 }
  0x1a   : > { %p556_p6 = pnand %p554_p5, %p542_p3  ;;  %p562_p12 = scmp.lt.s32.totalorder %s560_s26, %s553_s21 }
  0x1c   : > { %p557_p7 = pneg %p556_p6  ;;  %p563_p4 = por %p562_p12, %p561_p10 }
  0x1e   : > { %p564_p13 = pnand %p563_p4, %p557_p7 }
  0x20   : > { %567 = shalt.err (!%p564_p13)
}
  0x21   : > { %483 = dma.hbm_to_vmem [thread:$0]  (!%p749_p0), %s222_s10, 128, %s225_s12, %s212_s14  }
  0x22   : > { %p230_p11 = pnand %p468_p1, %p229_p2 }
  0x23   : > { %s764_s25 = sand.u32 (!%p230_p11), 1, %s632_s16  }
  0x24   : > { %233 = sbr.rel (%p230_p11) target bundleno = 189 (0xbd), region = 36  ;;  %s469_s5 = sshll.u32 (!%p230_p11), %s764_s25, 3 }
  0x25   : > { %s236_s6 = scalar_lea.sflag (!%p230_p11), [#allocation3], %s764_s25  ;;  %s239_s7 = scalar_lea.vmem (!%p230_p11), [#allocation2], %s469_s5 }
  0x29   : > { %619 = dma.done.wait (%p725_p8), %s236_s6, 128  }
  0x2a   : > { %621 = vsyncadd (%p725_p8), %s236_s6, 4294967168  ;;  %v651_v0 = vmov 0   ;;  %v298_v1 = vld [vmem:[%s823_s0] sm:$0xff]  ;;  %p290_p11 = scmp.lt.s32.totalorder %s640_s18, 1  ;;  %v297_v5 = vld [vmem:[%s239_s7] sm:$0xff]  ;;  %s473_s22 = sshll.u32 %s640_s18, 7 }
  0x2b   : > { %539 = vset.pattern.permute.xlu0 %v651_v0  ;;  %v305_v2 = vld [vmem:[%s824_s1] sm:$0xff]  ;;  %s279_s24 = scalar_lea.vmem [#allocation5], %s469_s5  ;;  %s328_s9 = scalar_lea.hbm %s827_s4, %s473_s22 }
  0x2c   : > { %301 = vperm.xlu0 %539, %v298_v1   ;;  %s291_s12 = scalar_select %p290_p11, %s640_s18, 1 }
  0x2d   : > { %s330_s26 = sshll.u32 %s279_s24, 4  ;;  %s315_s10 = scalar_lea.sflag [#allocation4], %s764_s25  ;;  %s331_s26 = int_to_ptr.vmem [resolvable:$true] %s330_s26 }
  0x2e   : > { %s471_s27 = sshll.u32 %s291_s12, 3  ;;  %s568_s11 = scalar_lea.vmem %s331_s26, 128 }
  0x2f   : > { %s295_s21 = scalar_lea.vmem %s825_s2, %s471_s27  ;;  %p569_p8 = scmp.ne.s32.totalorder %s331_s26, %s568_s11 }
  0x30   : > { %308 = vperm.xlu0 %539, %v305_v2   ;;  %v296_v4 = vld [vmem:[%s295_s21] sm:$0xff]  ;;  %s652_s7 = smov [#allocation5]  }
  0x31   : > { %p570_p12 = pnand %p569_p8, %p729_p9  ;;  %s572_s12 = sshll.u32 %s652_s7, 4  ;;  %s573_s12 = int_to_ptr.vmem [resolvable:$false] %s572_s12 }
  0x32   : > { %s574_s18 = scalar_lea.vmem %s573_s12, 256  ;;  %p575_p1 = scmp.lt.s32.totalorder %s331_s26, %s573_s12 }
  0x33   : > { %p571_p0 = pneg %p570_p12  ;;  %p576_p2 = scmp.lt.s32.totalorder %s574_s18, %s568_s11 }
  0x35   : > { %p577_p3 = por %p576_p2, %p575_p1 }
  0x37   : > { %p578_p5 = pnand %p577_p3, %p571_p0 }
  0xa7   : > { %v302_v3 = vpop.permute.xlu0 %301 }
  0xa8   : > { %v304_v7 = vmul.f32 %v302_v3, %v296_v4 }
  0xab   : > { %v309_v6 = vpop.permute.xlu0 %308 }
  0xac   : > { %v311_v8 = vmul.f32 %v309_v6, %v297_v5 }
  0xae   : > { %v312_v9 = vadd.f32 %v311_v8, %v304_v7 }
  0xb0   : > { %313 = vst [vmem:[%s279_s24] sm:$0xff] %v312_v9 }
  0xb1   : > { %581 = shalt.err (!%p578_p5)
}
  0xb2   : > { %s582_s5 = scalar_lea.hbm %s328_s9, 128  ;;  %s586_s13 = scalar_lea.hbm %s827_s4, 256 }
  0xb3   : > { %p583_p6 = scmp.ne.s32.totalorder %s328_s9, %s582_s5  ;;  %p587_p4 = scmp.lt.s32.totalorder %s328_s9, %s827_s4 }
  0xb4   : > { %p588_p13 = scmp.lt.s32.totalorder %s586_s13, %s582_s5 }
  0xb5   : > { %p584_p7 = pnand %p583_p6, %p729_p9 }
  0xb6   : > { %p589_p11 = por %p588_p13, %p587_p4 }
  0xb7   : > { %p585_p10 = pneg %p584_p7 }
  0xb9   : > { %p590_p8 = pnand %p589_p11, %p585_p10 }
  0xbb   : > { %593 = shalt.err (!%p590_p8)
}
  0xbc   : > { %478 = dma.vmem_to_hbm [thread:$0]  (%p729_p9), %s331_s26, 128, %s328_s9, %s315_s10  }
  0xbd PF: > { %s342_s22 = sand.u32 1, %s628_s15   ;;  %p833_p12 = scmp.ne.s32.totalorder %s831_s30, 0 }
  0xbe   : > { %p834_p0 = scmp.ge.s32.totalorder %s648_s20, 2  ;;  %s343_s24 = scalar_lea.sflag [#allocation4], %s342_s22 }
  0xc0   : > { %p485_p1 = pnand %p834_p0, %p833_p12 }
  0xc2   : > { %p486_p2 = pneg %p485_p1 }
  0xc4   : > { %623 = dma.done.wait (%p486_p2), %s343_s24, 128  }
  0xc5   : > { %625 = vsyncadd (%p486_p2), %s343_s24, 4294967168  ;;  %s20_s20 = sadd.s32 1, %s648_s20   ;;  %s835_s15 = smov %s632_s16 }
  0xc6   : > { %p17_p3 = scmp.ge.s32.totalorder %s20_s20, 4   ;;  %s836_s16 = smov %s636_s17 }
  0xc7   : > { %s837_s17 = smov %s734_s29  ;;  %s838_s18 = smov %s644_s19 }
  0xc8   : > { %s839_s19 = smov %s841_s23  ;;  %19 = sbr.rel (!%p17_p3) target bundleno = 6 (0x6), region = 90 }
  0xcd   :  { %348 = vsyncpa [#allocation3], 1 }
  0xce   :  { %350 = vsyncpa [#allocation3 + $0x1], 1 }
  0xcf   :  { %351 = vsyncpa [#allocation4], 1 }
  0xd0   :  { %353 = vsyncpa [#allocation4 + $0x1], 1 }

</bundles_post_ra>
